<compile_context>
chip_gen: v7x
topology: tpu7x:2x2x1
jax: 0.10.0
libtpu: 0.0.40
codegen_flags: <defaults>
</compile_context>

<pallas_src>
import math
import numpy as np
import jax
import jax.numpy as jnp
from jax.experimental import pallas as pl
from jax.experimental.pallas import tpu as pltpu


# ----------------------------------------------------------------------------
# Deterministic Gaussian weights (Gaussian(..., kernel_size=3, sigma=0.1))
# ----------------------------------------------------------------------------
def gaussian_weights_2d(kernel_size=3, sigma=0.1):
    coords = np.arange(kernel_size, dtype=np.float32)
    x_grid = np.tile(coords, (kernel_size, 1))            # x_grid[i, j] = j
    y_grid = x_grid.T                                      # y_grid[i, j] = i
    mean = (kernel_size - 1) / 2.0
    variance = sigma ** 2.0
    dist2 = (x_grid - mean) ** 2 + (y_grid - mean) ** 2
    k = (1.0 / (2.0 * math.pi * variance)) * np.exp(-dist2 / (2.0 * variance))
    return (k / np.sum(k)).astype(np.float32)              # (3, 3)


def gaussian_weights_1d(kernel_size=3, sigma=0.1):
    # Separable factor: outer(g1, g1) == the normalized 2-D Gaussian exactly
    # (the 1/(2*pi*var) prefactor cancels in the normalization).
    coords = np.arange(kernel_size, dtype=np.float64)
    mean = (kernel_size - 1) / 2.0
    g = np.exp(-((coords - mean) ** 2) / (2.0 * sigma ** 2))
    return (g / np.sum(g)).astype(np.float32)               # (3,)


_GW2D = gaussian_weights_2d(3, 0.1)   # pure-JAX reference (matches PyTorch exactly)
_G1D = gaussian_weights_1d(3, 0.1)    # kernel (separable form)


# ----------------------------------------------------------------------------
# Pallas kernel
# ----------------------------------------------------------------------------
def _log_kernel(yp_ref, yt_ref, op_ref, ot_ref):
    B, H, W = yp_ref.shape
    w0, w1, w2 = float(_G1D[0]), float(_G1D[1]), float(_G1D[2])

    def gaussian3x3(x):
        # Separable 3x3 cross-correlation, 'valid' padding -> (B, H-2, W-2).
        # Vertical (sublane-shifted) pass then horizontal (lane-shifted) pass.
        v = w0 * x[:, 0:H - 2, :] + w1 * x[:, 1:H - 1, :] + w2 * x[:, 2:H, :]
        return w0 * v[:, :, 0:W - 2] + w1 * v[:, :, 1:W - 1] + w2 * v[:, :, 2:W]

    def write_log(out_ref, g):
        # g: (B, H-2, W-2)
        dyp = jnp.abs(g[:, 1:, :] - g[:, :-1, :])           # (B, H-3, W-2)
        dxp = jnp.abs(g[:, :, 1:] - g[:, :, :-1])           # (B, H-2, W-3)
        dy = jnp.abs(dyp[:, 1:, :] - dyp[:, :-1, :])        # (B, H-4, W-2)
        dx = jnp.abs(dxp[:, :, 1:] - dxp[:, :, :-1])        # (B, H-2, W-4)
        # Zero-padded placement without any concatenates / jnp.pad:
        #   ConstantPad2d((2,2,1,1)) on dx and ConstantPad2d((1,1,2,2)) on dy, summed.
        out_ref[...] = jnp.zeros((B, H, W), jnp.float32)
        out_ref[:, 1:H - 1, 2:W - 2] = dx
        out_ref[:, 2:H - 2, 1:W - 1] = out_ref[:, 2:H - 2, 1:W - 1] + dy

    # Cast in VMEM (PyTorch's Gaussian() does .float()); avoids an extra HBM round trip.
    write_log(op_ref, gaussian3x3(yp_ref[...].astype(jnp.float32)))
    write_log(ot_ref, gaussian3x3(yt_ref[...].astype(jnp.float32)))


# ----------------------------------------------------------------------------
# Wrapper
# ----------------------------------------------------------------------------
def _choose_batch_block(N, H, W, budget_bytes=24 * 1024 * 1024):
    """Largest divisor of N that fits the VMEM budget; prefer grid >= 2 steps (megacore)."""
    # Rough per-image VMEM cost per grid step: 2 in + 2 out blocks, double-buffered (~8 slabs)
    # plus ~8 full-size f32 intermediates (gaussian / diff temporaries).
    per_image = H * W * 4 * 16
    cap = max(1, budget_bytes // per_image)
    divisors = [b for b in range(1, N + 1) if N % b == 0 and b <= cap]
    if not divisors:
        divisors = [1]
    preferred = [b for b in divisors if N // b >= 2]
    return max(preferred) if preferred else max(divisors)


def log_forward(y_pred, y_true):
    """Pallas equivalent of LOG.forward.

    Inputs:  (N, 1, H, W), any float dtype (cast to f32 inside the kernel).
    Returns: (LOG_pred, LOG_true), each (N, 1, H, W) float32.
    """
    N, C, H, W = y_pred.shape
    assert y_true.shape == y_pred.shape
    assert C == 1, "Gaussian(...) in the reference module is built with channels=1"
    assert H >= 5 and W >= 5, "LOG needs H >= 5 and W >= 5 (uses H-4 / W-4 extents)"

    # NOTE: no host-side .astype(f32) -- that would add a full extra HBM round trip.
    # TODO(synk): if only a *reduced* LOG loss is consumed downstream, fuse the reduction
    # in-kernel instead of writing two full-size maps (halves HBM traffic).
    # TODO(synk): very large single images (no batch to block over) would need H-tiling
    # with a 2-row halo; not needed for typical loss-map sizes, so blocks cover full H, W.

    B = _choose_batch_block(N, H, W)
    vmem_limit = 48 * 1024 * 1024  # > v5e(16M)/v6e(32M) scoped defaults, headroom under v7x 64 MiB

    # Channel dim squeezed -> kernel refs are (B, H, W); last two dims = full array dims.
    blk = pl.BlockSpec((B, None, H, W), lambda n: (n, 0, 0, 0))
    out_sds = jax.ShapeDtypeStruct((N, 1, H, W), jnp.float32)

    in_itemsize = np.dtype(y_pred.dtype).itemsize
    bytes_accessed = 2 * N * H * W * in_itemsize + 2 * N * H * W * 4
    cost = pl.CostEstimate(
        flops=int(2 * 22 * N * H * W),   # ~10 gaussian + ~8 diff/abs + ~4 assemble per elem
        transcendentals=0,
        bytes_accessed=int(bytes_accessed),
    )

    return pl.pallas_call(
        _log_kernel,
        grid=(N // B,),
        in_specs=[blk, blk],
        out_specs=[blk, blk],
        out_shape=(out_sds, out_sds),
        compiler_params=pltpu.CompilerParams(
            dimension_semantics=("parallel",),
            vmem_limit_bytes=vmem_limit,
        ),
        cost_estimate=cost,
    )(y_pred, y_true)


# ----------------------------------------------------------------------------
# Pure-JAX reference (mirrors the PyTorch module exactly; correctness check only)
# ----------------------------------------------------------------------------
def _log_reference(y_pred, y_true):
    w = jnp.asarray(_GW2D)

    def gauss(x):  # (N,1,H,W) -> (N,1,H-2,W-2), valid cross-correlation
        N, _, H, W = x.shape
        acc = jnp.zeros((N, 1, H - 2, W - 2), jnp.float32)
        for a in range(3):
            for b in range(3):
                acc = acc + w[a, b] * x[:, :, a:a + H - 2, b:b + W - 2]
        return acc

    def one(x):
        g = gauss(x.astype(jnp.float32))
        dyp = jnp.abs(g[:, :, 1:, :] - g[:, :, :-1, :])
        dxp = jnp.abs(g[:, :, :, 1:] - g[:, :, :, :-1])
        dy = jnp.abs(dyp[:, :, 1:, :] - dyp[:, :, :-1, :])
        dx = jnp.abs(dxp[:, :, :, 1:] - dxp[:, :, :, :-1])
        dx = jnp.pad(dx, ((0, 0), (0, 0), (1, 1), (2, 2)))
        dy = jnp.pad(dy, ((0, 0), (0, 0), (2, 2), (1, 1)))
        return dx + dy

    return one(y_pred), one(y_true)


if __name__ == "__main__":
    key = jax.random.PRNGKey(0)
    k1, k2 = jax.random.split(key)
    N, C, H, W = 4, 1, 16, 16
    y_pred = jax.random.normal(k1, (N, C, H, W), dtype=jnp.float32)
    y_true = jax.random.normal(k2, (N, C, H, W), dtype=jnp.float32)

    log_pred, log_true = jax.block_until_ready(log_forward(y_pred, y_true))

    ref_pred, ref_true = _log_reference(y_pred, y_true)
    np.testing.assert_allclose(np.asarray(log_pred), np.asarray(ref_pred), atol=1e-5, rtol=1e-5)
    np.testing.assert_allclose(np.asarray(log_true), np.asarray(ref_true), atol=1e-5, rtol=1e-5)
    assert log_pred.shape == (N, 1, H, W) and log_true.shape == (N, 1, H, W)

    print("KERNEL_OK")
</pallas_src>

<mosaic_0001>
module attributes {stable_mosaic.version = 11 : i64} {
  func.func @_log_kernel(%arg0: i32, %arg1: memref<2x1x16x16xf32, #tpu.memory_space<vmem>>, %arg2: memref<2x1x16x16xf32, #tpu.memory_space<vmem>>, %arg3: memref<2x1x16x16xf32, #tpu.memory_space<vmem>>, %arg4: memref<2x1x16x16xf32, #tpu.memory_space<vmem>>) attributes {dimension_semantics = [#tpu.dimension_semantics<parallel>], iteration_bounds = array<i64: 2>, scalar_prefetch = 0 : i64, scratch_operands = 0 : i64, tpu.core_type = #tpu.core_type<tc>, window_params = [{transform_indices = @transform_0, window_bounds = array<i64: 2, 1, 16, 16>}, {transform_indices = @transform_1, window_bounds = array<i64: 2, 1, 16, 16>}, {transform_indices = @transform_2, window_bounds = array<i64: 2, 1, 16, 16>}, {transform_indices = @transform_3, window_bounds = array<i64: 2, 1, 16, 16>}]} {
    %c0 = arith.constant 0 : index
    %c0_0 = arith.constant 0 : index
    %c0_1 = arith.constant 0 : index
    %c0_2 = arith.constant 0 : index
    %0 = vector.load %arg1[%c0, %c0_0, %c0_1, %c0_2] : memref<2x1x16x16xf32, #tpu.memory_space<vmem>>, vector<2x1x16x16xf32>
    %1 = vector.shape_cast %0 : vector<2x1x16x16xf32> to vector<2x16x16xf32>
    %2 = vector.extract_strided_slice %1 {offsets = [0, 0, 0], sizes = [2, 14, 16], strides = [1, 1, 1]} : vector<2x16x16xf32> to vector<2x14x16xf32>
    %cst = arith.constant 1.92874989E-22 : f32
    %3 = vector.broadcast %cst : f32 to vector<2x14x16xf32>
    %4 = arith.mulf %3, %2 : vector<2x14x16xf32>
    %5 = vector.extract_strided_slice %1 {offsets = [0, 1, 0], sizes = [2, 14, 16], strides = [1, 1, 1]} : vector<2x16x16xf32> to vector<2x14x16xf32>
    %cst_3 = arith.constant 1.000000e+00 : f32
    %6 = vector.broadcast %cst_3 : f32 to vector<2x14x16xf32>
    %7 = arith.mulf %6, %5 : vector<2x14x16xf32>
    %8 = arith.addf %4, %7 : vector<2x14x16xf32>
    %9 = vector.extract_strided_slice %1 {offsets = [0, 2, 0], sizes = [2, 14, 16], strides = [1, 1, 1]} : vector<2x16x16xf32> to vector<2x14x16xf32>
    %cst_4 = arith.constant 1.92874989E-22 : f32
    %10 = vector.broadcast %cst_4 : f32 to vector<2x14x16xf32>
    %11 = arith.mulf %10, %9 : vector<2x14x16xf32>
    %12 = arith.addf %8, %11 : vector<2x14x16xf32>
    %13 = vector.extract_strided_slice %12 {offsets = [0, 0, 0], sizes = [2, 14, 14], strides = [1, 1, 1]} : vector<2x14x16xf32> to vector<2x14x14xf32>
    %cst_5 = arith.constant 1.92874989E-22 : f32
    %14 = vector.broadcast %cst_5 : f32 to vector<2x14x14xf32>
    %15 = arith.mulf %14, %13 : vector<2x14x14xf32>
    %16 = vector.extract_strided_slice %12 {offsets = [0, 0, 1], sizes = [2, 14, 14], strides = [1, 1, 1]} : vector<2x14x16xf32> to vector<2x14x14xf32>
    %cst_6 = arith.constant 1.000000e+00 : f32
    %17 = vector.broadcast %cst_6 : f32 to vector<2x14x14xf32>
    %18 = arith.mulf %17, %16 : vector<2x14x14xf32>
    %19 = arith.addf %15, %18 : vector<2x14x14xf32>
    %20 = vector.extract_strided_slice %12 {offsets = [0, 0, 2], sizes = [2, 14, 14], strides = [1, 1, 1]} : vector<2x14x16xf32> to vector<2x14x14xf32>
    %cst_7 = arith.constant 1.92874989E-22 : f32
    %21 = vector.broadcast %cst_7 : f32 to vector<2x14x14xf32>
    %22 = arith.mulf %21, %20 : vector<2x14x14xf32>
    %23 = arith.addf %19, %22 : vector<2x14x14xf32>
    %24 = vector.extract_strided_slice %23 {offsets = [0, 1, 0], sizes = [2, 13, 14], strides = [1, 1, 1]} : vector<2x14x14xf32> to vector<2x13x14xf32>
    %25 = vector.extract_strided_slice %23 {offsets = [0, 0, 0], sizes = [2, 13, 14], strides = [1, 1, 1]} : vector<2x14x14xf32> to vector<2x13x14xf32>
    %26 = arith.subf %24, %25 : vector<2x13x14xf32>
    %27 = math.absf %26 : vector<2x13x14xf32>
    %28 = vector.extract_strided_slice %23 {offsets = [0, 0, 1], sizes = [2, 14, 13], strides = [1, 1, 1]} : vector<2x14x14xf32> to vector<2x14x13xf32>
    %29 = vector.extract_strided_slice %23 {offsets = [0, 0, 0], sizes = [2, 14, 13], strides = [1, 1, 1]} : vector<2x14x14xf32> to vector<2x14x13xf32>
    %30 = arith.subf %28, %29 : vector<2x14x13xf32>
    %31 = math.absf %30 : vector<2x14x13xf32>
    %32 = vector.extract_strided_slice %27 {offsets = [0, 1, 0], sizes = [2, 12, 14], strides = [1, 1, 1]} : vector<2x13x14xf32> to vector<2x12x14xf32>
    %33 = vector.extract_strided_slice %27 {offsets = [0, 0, 0], sizes = [2, 12, 14], strides = [1, 1, 1]} : vector<2x13x14xf32> to vector<2x12x14xf32>
    %34 = arith.subf %32, %33 : vector<2x12x14xf32>
    %35 = math.absf %34 : vector<2x12x14xf32>
    %36 = vector.extract_strided_slice %31 {offsets = [0, 0, 1], sizes = [2, 14, 12], strides = [1, 1, 1]} : vector<2x14x13xf32> to vector<2x14x12xf32>
    %37 = vector.extract_strided_slice %31 {offsets = [0, 0, 0], sizes = [2, 14, 12], strides = [1, 1, 1]} : vector<2x14x13xf32> to vector<2x14x12xf32>
    %38 = arith.subf %36, %37 : vector<2x14x12xf32>
    %39 = math.absf %38 : vector<2x14x12xf32>
    %cst_8 = arith.constant 0.000000e+00 : f32
    %40 = vector.broadcast %cst_8 : f32 to vector<2x16x16xf32>
    %c0_9 = arith.constant 0 : index
    %c0_10 = arith.constant 0 : index
    %c0_11 = arith.constant 0 : index
    %c0_12 = arith.constant 0 : index
    %41 = vector.load %arg3[%c0_9, %c0_10, %c0_11, %c0_12] : memref<2x1x16x16xf32, #tpu.memory_space<vmem>>, vector<2x1x16x16xf32>
    %42 = vector.shape_cast %41 : vector<2x1x16x16xf32> to vector<2x16x16xf32>
    %43 = vector.shape_cast %40 : vector<2x16x16xf32> to vector<2x1x16x16xf32>
    tpu.vector_store %arg3[%c0_9, %c0_10, %c0_11, %c0_12], %43 {strides = array<i32>} : memref<2x1x16x16xf32, #tpu.memory_space<vmem>>, vector<2x1x16x16xf32>,
    %c0_13 = arith.constant 0 : index
    %c0_14 = arith.constant 0 : index
    %c1 = arith.constant 1 : index
    %c2 = arith.constant 2 : index
    %44 = vector.load %arg3[%c0_13, %c0_14, %c1, %c2] : memref<2x1x16x16xf32, #tpu.memory_space<vmem>>, vector<2x1x14x12xf32>
    %45 = vector.shape_cast %44 : vector<2x1x14x12xf32> to vector<2x14x12xf32>
    %46 = vector.shape_cast %39 : vector<2x14x12xf32> to vector<2x1x14x12xf32>
    tpu.vector_store %arg3[%c0_13, %c0_14, %c1, %c2], %46 {strides = array<i32>} : memref<2x1x16x16xf32, #tpu.memory_space<vmem>>, vector<2x1x14x12xf32>,
    %c0_15 = arith.constant 0 : index
    %c0_16 = arith.constant 0 : index
    %c2_17 = arith.constant 2 : index
    %c1_18 = arith.constant 1 : index
    %47 = vector.load %arg3[%c0_15, %c0_16, %c2_17, %c1_18] : memref<2x1x16x16xf32, #tpu.memory_space<vmem>>, vector<2x1x12x14xf32>
    %48 = vector.shape_cast %47 : vector<2x1x12x14xf32> to vector<2x12x14xf32>
    %49 = arith.addf %48, %35 : vector<2x12x14xf32>
    %c0_19 = arith.constant 0 : index
    %c0_20 = arith.constant 0 : index
    %c2_21 = arith.constant 2 : index
    %c1_22 = arith.constant 1 : index
    %50 = vector.load %arg3[%c0_19, %c0_20, %c2_21, %c1_22] : memref<2x1x16x16xf32, #tpu.memory_space<vmem>>, vector<2x1x12x14xf32>
    %51 = vector.shape_cast %50 : vector<2x1x12x14xf32> to vector<2x12x14xf32>
    %52 = vector.shape_cast %49 : vector<2x12x14xf32> to vector<2x1x12x14xf32>
    tpu.vector_store %arg3[%c0_19, %c0_20, %c2_21, %c1_22], %52 {strides = array<i32>} : memref<2x1x16x16xf32, #tpu.memory_space<vmem>>, vector<2x1x12x14xf32>,
    %c0_23 = arith.constant 0 : index
    %c0_24 = arith.constant 0 : index
    %c0_25 = arith.constant 0 : index
    %c0_26 = arith.constant 0 : index
    %53 = vector.load %arg2[%c0_23, %c0_24, %c0_25, %c0_26] : memref<2x1x16x16xf32, #tpu.memory_space<vmem>>, vector<2x1x16x16xf32>
    %54 = vector.shape_cast %53 : vector<2x1x16x16xf32> to vector<2x16x16xf32>
    %55 = vector.extract_strided_slice %54 {offsets = [0, 0, 0], sizes = [2, 14, 16], strides = [1, 1, 1]} : vector<2x16x16xf32> to vector<2x14x16xf32>
    %cst_27 = arith.constant 1.92874989E-22 : f32
    %56 = vector.broadcast %cst_27 : f32 to vector<2x14x16xf32>
    %57 = arith.mulf %56, %55 : vector<2x14x16xf32>
    %58 = vector.extract_strided_slice %54 {offsets = [0, 1, 0], sizes = [2, 14, 16], strides = [1, 1, 1]} : vector<2x16x16xf32> to vector<2x14x16xf32>
    %cst_28 = arith.constant 1.000000e+00 : f32
    %59 = vector.broadcast %cst_28 : f32 to vector<2x14x16xf32>
    %60 = arith.mulf %59, %58 : vector<2x14x16xf32>
    %61 = arith.addf %57, %60 : vector<2x14x16xf32>
    %62 = vector.extract_strided_slice %54 {offsets = [0, 2, 0], sizes = [2, 14, 16], strides = [1, 1, 1]} : vector<2x16x16xf32> to vector<2x14x16xf32>
    %cst_29 = arith.constant 1.92874989E-22 : f32
    %63 = vector.broadcast %cst_29 : f32 to vector<2x14x16xf32>
    %64 = arith.mulf %63, %62 : vector<2x14x16xf32>
    %65 = arith.addf %61, %64 : vector<2x14x16xf32>
    %66 = vector.extract_strided_slice %65 {offsets = [0, 0, 0], sizes = [2, 14, 14], strides = [1, 1, 1]} : vector<2x14x16xf32> to vector<2x14x14xf32>
    %cst_30 = arith.constant 1.92874989E-22 : f32
    %67 = vector.broadcast %cst_30 : f32 to vector<2x14x14xf32>
    %68 = arith.mulf %67, %66 : vector<2x14x14xf32>
    %69 = vector.extract_strided_slice %65 {offsets = [0, 0, 1], sizes = [2, 14, 14], strides = [1, 1, 1]} : vector<2x14x16xf32> to vector<2x14x14xf32>
    %cst_31 = arith.constant 1.000000e+00 : f32
    %70 = vector.broadcast %cst_31 : f32 to vector<2x14x14xf32>
    %71 = arith.mulf %70, %69 : vector<2x14x14xf32>
    %72 = arith.addf %68, %71 : vector<2x14x14xf32>
    %73 = vector.extract_strided_slice %65 {offsets = [0, 0, 2], sizes = [2, 14, 14], strides = [1, 1, 1]} : vector<2x14x16xf32> to vector<2x14x14xf32>
    %cst_32 = arith.constant 1.92874989E-22 : f32
    %74 = vector.broadcast %cst_32 : f32 to vector<2x14x14xf32>
    %75 = arith.mulf %74, %73 : vector<2x14x14xf32>
    %76 = arith.addf %72, %75 : vector<2x14x14xf32>
    %77 = vector.extract_strided_slice %76 {offsets = [0, 1, 0], sizes = [2, 13, 14], strides = [1, 1, 1]} : vector<2x14x14xf32> to vector<2x13x14xf32>
    %78 = vector.extract_strided_slice %76 {offsets = [0, 0, 0], sizes = [2, 13, 14], strides = [1, 1, 1]} : vector<2x14x14xf32> to vector<2x13x14xf32>
    %79 = arith.subf %77, %78 : vector<2x13x14xf32>
    %80 = math.absf %79 : vector<2x13x14xf32>
    %81 = vector.extract_strided_slice %76 {offsets = [0, 0, 1], sizes = [2, 14, 13], strides = [1, 1, 1]} : vector<2x14x14xf32> to vector<2x14x13xf32>
    %82 = vector.extract_strided_slice %76 {offsets = [0, 0, 0], sizes = [2, 14, 13], strides = [1, 1, 1]} : vector<2x14x14xf32> to vector<2x14x13xf32>
    %83 = arith.subf %81, %82 : vector<2x14x13xf32>
    %84 = math.absf %83 : vector<2x14x13xf32>
    %85 = vector.extract_strided_slice %80 {offsets = [0, 1, 0], sizes = [2, 12, 14], strides = [1, 1, 1]} : vector<2x13x14xf32> to vector<2x12x14xf32>
    %86 = vector.extract_strided_slice %80 {offsets = [0, 0, 0], sizes = [2, 12, 14], strides = [1, 1, 1]} : vector<2x13x14xf32> to vector<2x12x14xf32>
    %87 = arith.subf %85, %86 : vector<2x12x14xf32>
    %88 = math.absf %87 : vector<2x12x14xf32>
    %89 = vector.extract_strided_slice %84 {offsets = [0, 0, 1], sizes = [2, 14, 12], strides = [1, 1, 1]} : vector<2x14x13xf32> to vector<2x14x12xf32>
    %90 = vector.extract_strided_slice %84 {offsets = [0, 0, 0], sizes = [2, 14, 12], strides = [1, 1, 1]} : vector<2x14x13xf32> to vector<2x14x12xf32>
    %91 = arith.subf %89, %90 : vector<2x14x12xf32>
    %92 = math.absf %91 : vector<2x14x12xf32>
    %cst_33 = arith.constant 0.000000e+00 : f32
    %93 = vector.broadcast %cst_33 : f32 to vector<2x16x16xf32>
    %c0_34 = arith.constant 0 : index
    %c0_35 = arith.constant 0 : index
    %c0_36 = arith.constant 0 : index
    %c0_37 = arith.constant 0 : index
    %94 = vector.load %arg4[%c0_34, %c0_35, %c0_36, %c0_37] : memref<2x1x16x16xf32, #tpu.memory_space<vmem>>, vector<2x1x16x16xf32>
    %95 = vector.shape_cast %94 : vector<2x1x16x16xf32> to vector<2x16x16xf32>
    %96 = vector.shape_cast %93 : vector<2x16x16xf32> to vector<2x1x16x16xf32>
    tpu.vector_store %arg4[%c0_34, %c0_35, %c0_36, %c0_37], %96 {strides = array<i32>} : memref<2x1x16x16xf32, #tpu.memory_space<vmem>>, vector<2x1x16x16xf32>,
    %c0_38 = arith.constant 0 : index
    %c0_39 = arith.constant 0 : index
    %c1_40 = arith.constant 1 : index
    %c2_41 = arith.constant 2 : index
    %97 = vector.load %arg4[%c0_38, %c0_39, %c1_40, %c2_41] : memref<2x1x16x16xf32, #tpu.memory_space<vmem>>, vector<2x1x14x12xf32>
    %98 = vector.shape_cast %97 : vector<2x1x14x12xf32> to vector<2x14x12xf32>
    %99 = vector.shape_cast %92 : vector<2x14x12xf32> to vector<2x1x14x12xf32>
    tpu.vector_store %arg4[%c0_38, %c0_39, %c1_40, %c2_41], %99 {strides = array<i32>} : memref<2x1x16x16xf32, #tpu.memory_space<vmem>>, vector<2x1x14x12xf32>,
    %c0_42 = arith.constant 0 : index
    %c0_43 = arith.constant 0 : index
    %c2_44 = arith.constant 2 : index
    %c1_45 = arith.constant 1 : index
    %100 = vector.load %arg4[%c0_42, %c0_43, %c2_44, %c1_45] : memref<2x1x16x16xf32, #tpu.memory_space<vmem>>, vector<2x1x12x14xf32>
    %101 = vector.shape_cast %100 : vector<2x1x12x14xf32> to vector<2x12x14xf32>
    %102 = arith.addf %101, %88 : vector<2x12x14xf32>
    %c0_46 = arith.constant 0 : index
    %c0_47 = arith.constant 0 : index
    %c2_48 = arith.constant 2 : index
    %c1_49 = arith.constant 1 : index
    %103 = vector.load %arg4[%c0_46, %c0_47, %c2_48, %c1_49] : memref<2x1x16x16xf32, #tpu.memory_space<vmem>>, vector<2x1x12x14xf32>
    %104 = vector.shape_cast %103 : vector<2x1x12x14xf32> to vector<2x12x14xf32>
    %105 = vector.shape_cast %102 : vector<2x12x14xf32> to vector<2x1x12x14xf32>
    tpu.vector_store %arg4[%c0_46, %c0_47, %c2_48, %c1_49], %105 {strides = array<i32>} : memref<2x1x16x16xf32, #tpu.memory_space<vmem>>, vector<2x1x12x14xf32>,
    return
  }
  func.func @transform_0(%arg0: i32) -> (i32, i32, i32, i32) {
    %c0_i32 = arith.constant 0 : i32
    %c0_i32_0 = arith.constant 0 : i32
    %c0_i32_1 = arith.constant 0 : i32
    %c0_i32_2 = arith.constant 0 : i32
    return %arg0, %c0_i32, %c0_i32_0, %c0_i32_1 : i32, i32, i32, i32
  }
  func.func @transform_1(%arg0: i32) -> (i32, i32, i32, i32) {
    %c0_i32 = arith.constant 0 : i32
    %c0_i32_0 = arith.constant 0 : i32
    %c0_i32_1 = arith.constant 0 : i32
    %c0_i32_2 = arith.constant 0 : i32
    return %arg0, %c0_i32, %c0_i32_0, %c0_i32_1 : i32, i32, i32, i32
  }
  func.func @transform_2(%arg0: i32) -> (i32, i32, i32, i32) {
    %c0_i32 = arith.constant 0 : i32
    %c0_i32_0 = arith.constant 0 : i32
    %c0_i32_1 = arith.constant 0 : i32
    %c0_i32_2 = arith.constant 0 : i32
    return %arg0, %c0_i32, %c0_i32_0, %c0_i32_1 : i32, i32, i32, i32
  }
  func.func @transform_3(%arg0: i32) -> (i32, i32, i32, i32) {
    %c0_i32 = arith.constant 0 : i32
    %c0_i32_0 = arith.constant 0 : i32
    %c0_i32_1 = arith.constant 0 : i32
    %c0_i32_2 = arith.constant 0 : i32
    return %arg0, %c0_i32, %c0_i32_0, %c0_i32_1 : i32, i32, i32, i32
  }
}

</mosaic_0001>

<bundles_post_ra>
// kernel: tpu_custom_call.1
= control target key start
LH: loop header
LB: loop body
LE: loop exit
PB: predicated region body
PF: predicated region fallthrough
CT: control target
= control target key end

     0   :  { %9 = vsyncpa [#allocation3], 0  ;;  %s1620_s0 = inlined_call_operand.hbm [shape: f32[4,1,16,16], index: 0, kind: input, shape index: {}]   ;;  %s1621_s1 = inlined_call_operand.hbm [shape: f32[4,1,16,16], index: 1, kind: input, shape index: {}]   ;;  %s1622_s2 = inlined_call_operand.hbm [shape: f32[4,1,16,16], index: 2, kind: output, shape index: {0}]   ;;  %s1623_s3 = inlined_call_operand.hbm [shape: f32[4,1,16,16], index: 3, kind: output, shape index: {1}]  }
   0x1   :  { %11 = vsyncpa [#allocation3 + $0x1], 0 }
   0x2   :  { %12 = vsyncpa [#allocation6], 0 }
   0x3   :  { %14 = vsyncpa [#allocation6 + $0x1], 0 }
   0x4   :  { %15 = vsyncpa [#allocation4], 0 }
   0x5   :  { %17 = vsyncpa [#allocation4 + $0x1], 0 }
   0x6   :  { %18 = vsyncpa [#allocation9], 0 }
   0x7   :  { %20 = vsyncpa [#allocation9 + $0x1], 0  ;;  %s1149_s12 = smov 0   ;;  %s1151_s13 = smov 0  }
   0x8   :  { %s1153_s14 = smov 0   ;;  %s1155_s15 = smov 0  }
   0x9 LB: > { %s1170_s16 = sadd.s32 4294967295, %s1115_s15   ;;  %s855_s17 = sadd.s32 4294967294, %s1115_s15   ;;  %s1115_s15 = sphi %s1155_s15, %s1639_s15   ;;  %s1111_s14 = sphi %s1153_s14, %s1638_s14   ;;  %s1107_s13 = sphi %s1151_s13, %s1637_s13   ;;  %s1103_s12 = sphi %s1149_s12, %s1636_s12  }
   0xa   : > { %s1174_s18 = sadd.s32 1, %s1115_s15   ;;  %s33_s19 = sadd.s32 1, %s1111_s14 }
   0xb   : > { %s30_s20 = ssub.s32 %s1115_s15, %s1174_s18  ;;  %p40_p0 = scmp.ne.s32.totalorder %s1111_s14, %s1107_s13 }
   0xc   : > { %p31_p1 = scmp.eq.s32.totalorder %s30_s20, 0  ;;  %p41_p2 = scmp.eq.s32.totalorder %s1115_s15, 0 }
   0xd   : > { %p46_p3 = scmp.ne.s32.totalorder %s1107_s13, %s1103_s12  ;;  %p47_p4 = scmp.eq.s32.totalorder %s1170_s16, 0 }
   0xe   : > { %s1186_s21 = scalar_select %p31_p1, %s1111_s14, %s33_s19  }
   0xf   : > { %p1188_p5 = por %p41_p2, %p40_p0  ;;  %p1192_p6 = por %p47_p4, %p46_p3 }
  0x10   : > { %p96_p7 = scmp.eq.s32.totalorder %s1170_s16, 1  ;;  %p102_p8 = scmp.eq.s32.totalorder %s855_s17, 1 }
  0x11   : > { %s1627_s23 = scalar_select %p1192_p6, 1, 0 }
  0x12   : > { %p911_p10 = scmp.lt.s32.totalorder %s1115_s15, 2  ;;  %p1199_p11 = por %p96_p7, %p40_p0 }
  0x13   : > { %p1203_p12 = por %p102_p8, %p46_p3  ;;  %s1208_s26 = sand.u32 1, %s1111_s14  }
  0x14   : > { %s1628_s24 = scalar_select %p1199_p11, 1, 0 }
  0x15   : > { %s1629_s25 = scalar_select %p1203_p12, 1, 0 }
  0x16   : > { %s882_s27 = sshll.u32 %s1115_s15, 9  ;;  %s858_s28 = sshll.u32 %s1208_s26, 5 }
  0x17   : > { %s1217_s4 = scalar_lea.hbm %s1620_s0, %s882_s27  ;;  %s152_s5 = scalar_lea.vmem [#allocation2], %s858_s28 }
  0x18   : > { %s160_s6 = sshll.u32 %s152_s5, 4  ;;  %p1223_p13 = pnand %p911_p10, %p1188_p5  ;;  %s1227_s6 = int_to_ptr.vmem [resolvable:$true] %s160_s6 }
  0x19   : > { %s149_s8 = scalar_lea.sflag [#allocation3], %s1208_s26  ;;  %s953_s9 = scalar_lea.hbm %s1217_s4, 512 }
  0x1a   : > { %p954_p0 = scmp.ne.s32.totalorder %s1217_s4, %s953_s9  ;;  %p955_p1 = pneg %p1223_p13 }
  0x1b   : > { %s958_s17 = scalar_lea.hbm %s1620_s0, 1024  ;;  %p959_p4 = scmp.lt.u32.totalorder %s1217_s4, %s1620_s0 }
  0x1c   : > { %p956_p2 = pnand %p955_p1, %p954_p0  ;;  %p960_p5 = scmp.lt.u32.totalorder %s958_s17, %s953_s9 }
  0x1d   : > { %p962_p8 = scmp.lt.u32.totalorder %s953_s9, %s1217_s4 }
  0x1e   : > { %p957_p3 = pneg %p956_p2  ;;  %p961_p7 = por %p960_p5, %p959_p4 }
  0x20   : > { %p963_p10 = por %p962_p8, %p961_p7 }
  0x22   : > { %p964_p9 = pnand %p963_p10, %p957_p3 }
  0x24   : > { %967 = shalt.err (!%p964_p9)
}
  0x25   : > { %s968_s22 = scalar_lea.vmem %s1227_s6, 512  ;;  %s1117_s29 = smov [#allocation2]  }
  0x26   : > { %p969_p0 = scmp.ne.s32.totalorder %s1227_s6, %s968_s22  ;;  %s973_s30 = sshll.u32 %s1117_s29, 4  ;;  %s974_s30 = int_to_ptr.vmem [resolvable:$false] %s973_s30 }
  0x27   : > { %s975_s5 = scalar_lea.vmem %s974_s30, 1024  ;;  %p976_p11 = scmp.lt.s32.totalorder %s1227_s6, %s974_s30 }
  0x28   : > { %p971_p2 = pnand %p969_p0, %p955_p1  ;;  %p977_p4 = scmp.lt.s32.totalorder %s975_s5, %s968_s22 }
  0x2a   : > { %p972_p12 = pneg %p971_p2  ;;  %p978_p5 = por %p977_p4, %p976_p11 }
  0x2c   : > { %p979_p7 = pnand %p978_p5, %p972_p12 }
  0x2e   : > { %982 = shalt.err (!%p979_p7)
}
  0x2f   : > { %s1118_s9 = smov 128   ;;  %s1119_s10 = smov 8  }
  0x30   : > { %900 = dma.hbm_to_vmem [thread:$0]  (!%p1223_p13), %s1217_s4, 512, %s1227_s6, %s149_s8, %s1118_s9, %s1118_s9, %s1119_s10  }
  0x31   : > { %p866_p9 = scmp.ge.s32.totalorder %s1115_s15, 1  ;;  %p190_p11 = scmp.lt.s32.totalorder %s1115_s15, 3 }
  0x32   : > { %s1271_s20 = scalar_lea.hbm %s1621_s1, %s882_s27  ;;  %s174_s22 = scalar_lea.vmem [#allocation5], %s858_s28 }
  0x33   : > { %p1262_p12 = pnand %p866_p9, %p190_p11  ;;  %s182_s29 = sshll.u32 %s174_s22, 4  ;;  %s1275_s29 = int_to_ptr.vmem [resolvable:$true] %s182_s29 }
  0x34   : > { %s171_s4 = scalar_lea.sflag [#allocation6], %s1208_s26  ;;  %s983_s6 = scalar_lea.hbm %s1271_s20, 512 }
  0x35   : > { %p984_p3 = scmp.ne.s32.totalorder %s1271_s20, %s983_s6  ;;  %s988_s27 = scalar_lea.hbm %s1621_s1, 1024 }
  0x36   : > { %p989_p0 = scmp.lt.u32.totalorder %s1271_s20, %s1621_s1  ;;  %p990_p2 = scmp.lt.u32.totalorder %s988_s27, %s983_s6 }
  0x37   : > { %p986_p8 = pnand %p984_p3, %p955_p1  ;;  %p992_p5 = scmp.lt.u32.totalorder %s983_s6, %s1271_s20 }
  0x38   : > { %p991_p4 = por %p990_p2, %p989_p0 }
  0x39   : > { %p987_p10 = pneg %p986_p8 }
  0x3a   : > { %p993_p7 = por %p992_p5, %p991_p4 }
  0x3c   : > { %p994_p9 = pnand %p993_p7, %p987_p10 }
  0x3e   : > { %997 = shalt.err (!%p994_p9)
}
  0x3f   : > { %s998_s28 = scalar_lea.vmem %s1275_s29, 512  ;;  %s1120_s19 = smov [#allocation5]  }
  0x40   : > { %p999_p11 = scmp.ne.s32.totalorder %s1275_s29, %s998_s28  ;;  %s1003_s22 = sshll.u32 %s1120_s19, 4  ;;  %s1004_s22 = int_to_ptr.vmem [resolvable:$false] %s1003_s22 }
  0x41   : > { %s1005_s8 = scalar_lea.vmem %s1004_s22, 1024  ;;  %p1006_p6 = scmp.lt.s32.totalorder %s1275_s29, %s1004_s22 }
  0x42   : > { %p1001_p3 = pnand %p999_p11, %p955_p1  ;;  %p1007_p0 = scmp.lt.s32.totalorder %s1005_s8, %s998_s28 }
  0x44   : > { %p1002_p8 = pneg %p1001_p3  ;;  %p1008_p2 = por %p1007_p0, %p1006_p6 }
  0x46   : > { %p1009_p4 = pnand %p1008_p2, %p1002_p8 }
  0x48   : > { %1012 = shalt.err (!%p1009_p4)
}
  0x49   : > { %903 = dma.hbm_to_vmem [thread:$0]  (!%p1223_p13), %s1271_s20, 512, %s1275_s29, %s171_s4, %s1118_s9, %s1118_s9, %s1119_s10  }
  0x4a   : > { %194 = sbr.rel (%p1262_p12) target bundleno = 518 (0x206), region = 28  ;;  %s1309_s6 = sand.u32 (!%p1262_p12), 1, %s1107_s13  }
  0x4b   : > { %s1312_s30 = sshll.u32 (!%p1262_p12), %s1309_s6, 5  ;;  %s197_s7 = scalar_lea.sflag (!%p1262_p12), [#allocation3], %s1309_s6 }
  0x4c   : > { %s1316_s27 = scalar_lea.vmem (!%p1262_p12), [#allocation2], %s1312_s30  ;;  %p1632_p6 = scmp.ne.s32.totalorder (!%p1262_p12), %s1627_s23, 0 }
  0x51   : > { %1086 = dma.done.wait (%p1632_p6), %s197_s7, 512  }
  0x52   : > { %1088 = vsyncadd (%p1632_p6), %s197_s7, 4294966784  ;;  %s206_s26 = scalar_lea.sflag [#allocation6], %s1309_s6  ;;  %s1324_s9 = scalar_lea.vmem [#allocation5], %s1312_s30 }
  0x53   : > { %1090 = dma.done.wait (%p1632_p6), %s206_s26, 512  }
  0x54   : > { %1092 = vsyncadd (%p1632_p6), %s206_s26, 4294966784  ;;  %v249_v0 = vld [vmem:[%s1316_s27 + $0x18] sm:$0xff]  ;;  %v247_v1 = vld [vmem:[%s1316_s27 + $0x8] sm:$0xff]  ;;  %vm258_vm0 = vcmask 1046528   ;;  %vm277_vm1 = vcmask 1045504   ;;  %s1121_s23 = smov 127  }
  0x55   : > { %v473_v2 = vld [vmem:[%s1324_s9 + $0x8] sm:$0xff]  ;;  %v253_v3 = vmul.f32 1.9287499e-22, %v249_v0  ;;  %v263_v4 = vrot.slane %v249_v0, 1  ;;  %v251_v5 = vmul.f32 1.9287499e-22, %v247_v1 }
  0x56   : > { %v260_v6 = vrot.slane %v247_v1, 1  ;;  %v477_v7 = vmul.f32 1.9287499e-22, %v473_v2  ;;  %v485_v8 = vrot.slane %v473_v2, 1  ;;  %v246_v9 = vld [vmem:[%s1316_s27] sm:$0xff]  ;;  %v475_v10 = vld [vmem:[%s1324_s9 + $0x18] sm:$0xff] }
  0x57   : > { %v272_v11 = vadd.f32 %v263_v4, %v253_v3  ;;  %v282_v12 = vrot.slane %v253_v3, 2  ;;  %v279_v14 = vrot.slane %v251_v5, 2  ;;  %v472_v15 = vld [vmem:[%s1324_s9] sm:$0xff]  ;;  %v250_v18 = vmul.f32 1.9287499e-22, %v246_v9  ;;  %v248_v27 = vld [vmem:[%s1316_s27 + $0x10] sm:$0xff] }
  0x58   : > { %v270_v13 = vadd.f32 %v260_v6, %v251_v5  ;;  %v495_v16 = vadd.f32 %v485_v8, %v477_v7  ;;  %v503_v17 = vrot.slane %v477_v7, 2  ;;  %v259_v19 = vrot.slane %v246_v9, 1  ;;  %v474_v28 = vld [vmem:[%s1324_s9 + $0x10] sm:$0xff]  ;;  %s1122_s10 = smov 126   ;;  %s1123_s11 = smov 1  }
  0x59   : > { %v291_v20 = vadd.f32 %v282_v12, %v272_v11  ;;  %v479_v22 = vmul.f32 1.9287499e-22, %v475_v10  ;;  %v488_v23 = vrot.slane %v475_v10, 1  ;;  %v278_v25 = vrot.slane %v250_v18, 2  ;;  %s1396_s20 = scalar_lea.vmem [#allocation7], %s1312_s30  ;;  %s1426_s29 = scalar_lea.vmem [#allocation8], %s1312_s30 }
  0x5a   : > { %v289_v21 = vadd.f32 %v279_v14, %v270_v13  ;;  %v261_v24 = vsel %vm258_vm0, %v259_v19, %v260_v6  ;;  %v476_v26 = vmul.f32 1.9287499e-22, %v472_v15  ;;  %v513_v29 = vadd.f32 %v503_v17, %v495_v16  ;;  %s886_s4 = sshll.u32 %s1170_s16, 9  ;;  %s710_s5 = sshll.u32 %s1396_s20, 4  ;;  %s1520_s5 = int_to_ptr.vmem [resolvable:$true] %s710_s5 }
  0x5b   : > { %306 = vrot.lane.b32.xlu1 %v291_v20, %s1121_s23  ;;  %v269_v30 = vadd.f32 %v261_v24, %v250_v18  ;;  %v497_v31 = vadd.f32 %v488_v23, %v479_v22  ;;  %v280_v32 = vsel %vm277_vm1, %v278_v25, %v279_v14  ;;  %v506_v33 = vrot.slane %v479_v22, 2  ;;  %s1518_s19 = scalar_lea.hbm %s1622_s2, %s886_s4  ;;  %s691_s22 = scalar_lea.sflag [#allocation4], %s1309_s6 }
  0x5c   : > { %302 = vrot.lane.b32.xlu0 %v289_v21, %s1121_s23  ;;  %v484_v34 = vrot.slane %v472_v15, 1  ;;  %v502_v35 = vrot.slane %v476_v26, 2  ;;  %v252_v37 = vmul.f32 1.9287499e-22, %v248_v27  ;;  %v262_v38 = vrot.slane %v248_v27, 1  ;;  %s1013_s8 = scalar_lea.vmem %s1520_s5, 512 }
  0x5d   : > { %v288_v36 = vadd.f32 %v280_v32, %v269_v30  ;;  %v478_v39 = vmul.f32 1.9287499e-22, %v474_v28  ;;  %v515_v40 = vadd.f32 %v506_v33, %v497_v31  ;;  %v487_v43 = vrot.slane %v474_v28, 1  ;;  %p1014_p13 = scmp.ne.s32.totalorder %s1520_s5, %s1013_s8  ;;  %p1633_p1 = scmp.ne.s32.totalorder %s1628_s24, 0 }
  0x5e   : > { %v486_v41 = vsel %vm258_vm0, %v484_v34, %v485_v8  ;;  %v504_v42 = vsel %vm277_vm1, %v502_v35, %v503_v17  ;;  %v264_v45 = vsel %vm258_vm0, %v262_v38, %v263_v4  ;;  %v281_v46 = vrot.slane %v252_v37, 2  ;;  %s1125_s30 = smov [#allocation7]  }
  0x5f   : > { %526 = vrot.lane.b32.xlu1 %v513_v29, %s1121_s23  ;;  %v494_v44 = vadd.f32 %v486_v41, %v476_v26  ;;  %v505_v47 = vrot.slane %v478_v39, 2  ;;  %v271_v48 = vadd.f32 %v264_v45, %v252_v37  ;;  %v489_v49 = vsel %vm258_vm0, %v487_v43, %v488_v23  ;;  %p1015_p12 = pnand %p1014_p13, %p1633_p1  ;;  %s1017_s7 = sshll.u32 %s1125_s30, 4  ;;  %s1018_s7 = int_to_ptr.vmem [resolvable:$false] %s1017_s7 }
  0x60   : > { %300 = vrot.lane.b32.xlu0 %v288_v36, %s1121_s23  ;;  %v283_v51 = vsel %vm277_vm1, %v281_v46, %v282_v12  ;;  %v496_v52 = vadd.f32 %v489_v49, %v478_v39  ;;  %v293_v56 = vmul.f32 1.9287499e-22, %v289_v21  ;;  %v292_v57 = vmul.f32 1.9287499e-22, %v288_v36  ;;  %s1019_s27 = scalar_lea.vmem %s1018_s7, 1024  ;;  %p1020_p5 = scmp.lt.s32.totalorder %s1520_s5, %s1018_s7 }
  0x61   : > { %v512_v50 = vadd.f32 %v504_v42, %v494_v44  ;;  %v507_v53 = vsel %vm277_vm1, %v505_v47, %v506_v33  ;;  %v290_v54 = vadd.f32 %v283_v51, %v271_v48  ;;  %v295_v58 = vmul.f32 1.9287499e-22, %v291_v20  ;;  %p1016_p10 = pneg %p1015_p12  ;;  %p1021_p7 = scmp.lt.s32.totalorder %s1019_s27, %s1013_s8 }
  0x62   : > { %v514_v55 = vadd.f32 %v507_v53, %v496_v52  ;;  %v517_v60 = vmul.f32 1.9287499e-22, %v513_v29  ;;  %v519_v62 = vmul.f32 1.9287499e-22, %v515_v40  ;;  %vm340_vm2 = vcmask 1040384  }
  0x63   : > { %530 = vrot.lane.b32.xlu1 %v515_v40, %s1121_s23  ;;  %v294_v59 = vmul.f32 1.9287499e-22, %v290_v54  ;;  %v516_v61 = vmul.f32 1.9287499e-22, %v512_v50  ;;  %vm425_vm3 = vcmask 130048   ;;  %v1124_v49 = vmov 0.0   ;;  %p1022_p9 = por %p1021_p7, %p1020_p5 }
  0x64   : > { %524 = vrot.lane.b32.xlu0 %v512_v50, %s1121_s23  ;;  %v518_v63 = vmul.f32 1.9287499e-22, %v514_v55  ;;  %427 = vst.msk [vmem:[%s1396_s20 + $0x8] sm:$0xff] %vm425_vm3, %v1124_v49  ;;  %426 = vst.msk [vmem:[%s1396_s20] sm:$0xff] %vm425_vm3, %v1124_v49  ;;  %vm432_vm4 = vcmask 111632   ;;  %vm430_vm5 = vcmask 113680  }
  0x65   : > { %428 = vst.msk [vmem:[%s1396_s20 + $0x10] sm:$0xff] %vm425_vm3, %v1124_v49  ;;  %429 = vst.msk [vmem:[%s1396_s20 + $0x18] sm:$0xff] %vm425_vm3, %v1124_v49  ;;  %vm468_vm6 = vcmask 117768   ;;  %vm466_vm7 = vcmask 121864   ;;  %p1023_p11 = pnand %p1022_p9, %p1016_p10 }
  0x66   : > { %649 = vst.msk [vmem:[%s1426_s29 + $0x8] sm:$0xff] %vm425_vm3, %v1124_v49  ;;  %648 = vst.msk [vmem:[%s1426_s29] sm:$0xff] %vm425_vm3, %v1124_v49 }
  0x67   : > { %304 = vrot.lane.b32.xlu1 %v290_v54, %s1121_s23  ;;  %650 = vst.msk [vmem:[%s1426_s29 + $0x10] sm:$0xff] %vm425_vm3, %v1124_v49  ;;  %651 = vst.msk [vmem:[%s1426_s29 + $0x18] sm:$0xff] %vm425_vm3, %v1124_v49 }
  0x68   : > { %528 = vrot.lane.b32.xlu0 %v514_v55, %s1121_s23 }
  0x6b   : > { %322 = vrot.lane.b32.xlu1 %v293_v56, %s1122_s10 }
  0x6c   : > { %320 = vrot.lane.b32.xlu0 %v292_v57, %s1122_s10 }
  0x6f   : > { %326 = vrot.lane.b32.xlu1 %v295_v58, %s1122_s10 }
  0x70   : > { %324 = vrot.lane.b32.xlu0 %v294_v59, %s1122_s10 }
  0x73   : > { %546 = vrot.lane.b32.xlu1 %v517_v60, %s1122_s10 }
  0x74   : > { %544 = vrot.lane.b32.xlu0 %v516_v61, %s1122_s10 }
  0x77   : > { %550 = vrot.lane.b32.xlu1 %v519_v62, %s1122_s10 }
  0x78   : > { %548 = vrot.lane.b32.xlu0 %v518_v63, %s1122_s10 }
  0xcd   : > { %v307_v0 = vpop.permute.xlu1 %306 }
  0xce   : > { %v303_v1 = vpop.permute.xlu0 %302  ;;  %v315_v14 = vadd.f32 %v307_v0, %v295_v58 }
  0xcf   : > { %v313_v8 = vadd.f32 %v303_v1, %v293_v56 }
  0xd1   : > { %v527_v2 = vpop.permute.xlu1 %526 }
  0xd2   : > { %v301_v3 = vpop.permute.xlu0 %300  ;;  %v537_v25 = vadd.f32 %v527_v2, %v517_v60 }
  0xd3   : > { %v312_v9 = vadd.f32 %v301_v3, %v292_v57 }
  0xd5   : > { %v531_v4 = vpop.permute.xlu1 %530 }
  0xd6   : > { %v525_v5 = vpop.permute.xlu0 %524  ;;  %v539_v35 = vadd.f32 %v531_v4, %v519_v62 }
  0xd7   : > { %v536_v26 = vadd.f32 %v525_v5, %v516_v61 }
  0xd9   : > { %v305_v6 = vpop.permute.xlu1 %304 }
  0xda   : > { %v529_v7 = vpop.permute.xlu0 %528  ;;  %v314_v15 = vadd.f32 %v305_v6, %v294_v59 }
  0xdb   : > { %v538_v36 = vadd.f32 %v529_v7, %v518_v63 }
  0xdd   : > { %v323_v10 = vpop.permute.xlu1 %322 }
  0xde   : > { %v321_v11 = vpop.permute.xlu0 %320  ;;  %v1354_v12 = vadd.f32 %v323_v10, %v313_v8 }
  0xdf   : > { %v1356_v13 = vadd.f32 %v321_v11, %v312_v9 }
  0xe0   : > { %v342_v16 = vrot.slane %v1354_v12, 7  ;;  %361 = vrot.lane.b32.xlu1 %v1354_v12, %s1123_s11 }
  0xe1   : > { %v341_v17 = vrot.slane %v1356_v13, 7  ;;  %359 = vrot.lane.b32.xlu0 %v1356_v13, %s1123_s11  ;;  %v327_v18 = vpop.permute.xlu1 %326 }
  0xe2   : > { %v325_v19 = vpop.permute.xlu0 %324  ;;  %v1365_v21 = vadd.f32 %v327_v18, %v315_v14 }
  0xe3   : > { %v351_v20 = vsub.f32 %v1356_v13, %v341_v17  ;;  %v1367_v22 = vadd.f32 %v325_v19, %v314_v15  ;;  %v343_v23 = vsel %vm340_vm2, %v341_v17, %v342_v16 }
  0xe4   : > { %v352_v24 = vsub.f32 %v1354_v12, %v343_v23  ;;  %365 = vrot.lane.b32.xlu1 %v1365_v21, %s1123_s11  ;;  %v345_v50 = vrot.slane %v1365_v21, 7 }
  0xe5   : > { %v355_v27 = vand.u32 2147483647, %v351_v20  ;;  %363 = vrot.lane.b32.xlu0 %v1367_v22, %s1123_s11  ;;  %v547_v28 = vpop.permute.xlu1 %546  ;;  %v344_v51 = vrot.slane %v1367_v22, 7 }
  0xe6   : > { %v545_v29 = vpop.permute.xlu0 %544  ;;  %v356_v30 = vand.u32 2147483647, %v352_v24  ;;  %v1375_v31 = vadd.f32 %v547_v28, %v537_v25 }
  0xe7   : > { %v1377_v32 = vadd.f32 %v545_v29, %v536_v26  ;;  %v383_v33 = vrot.slane %v355_v27, 7  ;;  %v346_v52 = vsel %vm340_vm2, %v344_v51, %v345_v50  ;;  %v353_v55 = vsub.f32 %v1367_v22, %v344_v51 }
  0xe8   : > { %v384_v34 = vrot.slane %v356_v30, 7  ;;  %584 = vrot.lane.b32.xlu1 %v1375_v31, %s1123_s11  ;;  %v565_v53 = vrot.slane %v1375_v31, 7  ;;  %v354_v56 = vsub.f32 %v1365_v21, %v346_v52 }
  0xe9   : > { %582 = vrot.lane.b32.xlu0 %v1377_v32, %s1123_s11  ;;  %v393_v37 = vsub.f32 %v355_v27, %v383_v33  ;;  %v551_v38 = vpop.permute.xlu1 %550  ;;  %v564_v54 = vrot.slane %v1377_v32, 7  ;;  %v357_v60 = vand.u32 2147483647, %v353_v55 }
  0xea   : > { %v549_v39 = vpop.permute.xlu0 %548  ;;  %v385_v40 = vsel %vm340_vm2, %v383_v33, %v384_v34  ;;  %v1384_v41 = vadd.f32 %v551_v38, %v539_v35  ;;  %v358_v62 = vand.u32 2147483647, %v354_v56 }
  0xeb   : > { %v1386_v42 = vadd.f32 %v549_v39, %v538_v36  ;;  %v394_v43 = vsub.f32 %v356_v30, %v385_v40  ;;  %v397_v44 = vand.u32 2147483647, %v393_v37  ;;  %v566_v59 = vsel %vm340_vm2, %v564_v54, %v565_v53 }
  0xec   : > { %588 = vrot.lane.b32.xlu1 %v1384_v41, %s1123_s11  ;;  %v568_v57 = vrot.slane %v1384_v41, 7  ;;  %v574_v61 = vsub.f32 %v1377_v32, %v564_v54  ;;  %v575_v63 = vsub.f32 %v1375_v31, %v566_v59  ;;  %v386_v5 = vrot.slane %v357_v60, 7 }
  0xed   : > { %586 = vrot.lane.b32.xlu0 %v1386_v42, %s1123_s11  ;;  %v398_v45 = vand.u32 2147483647, %v394_v43  ;;  %v444_v47 = vrot.slane %v397_v44, 2  ;;  %v567_v58 = vrot.slane %v1386_v42, 7  ;;  %v387_v6 = vrot.slane %v358_v62, 7 }
  0xee   : > { %v578_v1 = vand.u32 2147483647, %v574_v61  ;;  %v579_v9 = vand.u32 2147483647, %v575_v63  ;;  %v395_v34 = vsub.f32 %v357_v60, %v386_v5 }
  0xef   : > { %v445_v46 = vrot.slane %v398_v45, 2  ;;  %v569_v0 = vsel %vm340_vm2, %v567_v58, %v568_v57  ;;  %v1420_v2 = vsub.f32 %v1386_v42, %v567_v58  ;;  %v388_v16 = vsel %vm340_vm2, %v386_v5, %v387_v6 }
  0xf0   : > { %v577_v10 = vsub.f32 %v1384_v41, %v569_v0  ;;  %v606_v17 = vrot.slane %v578_v1, 7  ;;  %v607_v20 = vrot.slane %v579_v9, 7  ;;  %v396_v28 = vsub.f32 %v358_v62, %v388_v16 }
  0xf1   : > { %452 = vrot.lane.b32.xlu1 %v445_v46, %s1123_s11  ;;  %v446_v48 = vsel %vm277_vm1, %v444_v47, %v445_v46  ;;  %v399_v44 = vand.u32 2147483647, %v395_v34 }
  0xf2   : > { %450 = vrot.lane.b32.xlu0 %v446_v48, %s1123_s11  ;;  %v581_v23 = vand.u32 2147483647, %v577_v10  ;;  %v608_v30 = vsel %vm340_vm2, %v606_v17, %v607_v20  ;;  %v400_v39 = vand.u32 2147483647, %v396_v28  ;;  %v616_v45 = vsub.f32 %v578_v1, %v606_v17 }
  0xf3   : > { %v617_v40 = vsub.f32 %v579_v9, %v608_v30 }
  0xf4   : > { %v610_v33 = vrot.slane %v581_v23, 7  ;;  %v448_v48 = vrot.slane %v400_v39, 2 }
  0xf5   : > { %v621_v49 = vand.u32 2147483647, %v617_v40 }
  0xf7   : > { %v665_v53 = vrot.slane %v621_v49, 2 }
 0x152   : > { %v362_v3 = vpop.permute.xlu1 %361 }
 0x153   : > { %v360_v4 = vpop.permute.xlu0 %359  ;;  %v372_v7 = vsub.f32 %v1354_v12, %v362_v3 }
 0x154   : > { %v371_v8 = vsub.f32 %v1356_v13, %v360_v4  ;;  %v580_v13 = vand.u32 2147483647, %v1420_v2 }
 0x155   : > { %v1436_v11 = vand.u32 2147483647, %v372_v7 }
 0x156   : > { %v1438_v12 = vand.u32 2147483647, %v371_v8  ;;  %v366_v14 = vpop.permute.xlu1 %365  ;;  %v609_v29 = vrot.slane %v580_v13, 7 }
 0x157   : > { %v364_v15 = vpop.permute.xlu0 %363  ;;  %v374_v18 = vsub.f32 %v1365_v21, %v366_v14  ;;  %407 = vrot.lane.b32.xlu1 %v1436_v11, %s1123_s11 }
 0x158   : > { %v373_v19 = vsub.f32 %v1367_v22, %v364_v15  ;;  %405 = vrot.lane.b32.xlu0 %v1438_v12, %s1123_s11  ;;  %v611_v43 = vsel %vm340_vm2, %v609_v29, %v610_v33  ;;  %v618_v51 = vsub.f32 %v580_v13, %v609_v29 }
 0x159   : > { %v1448_v24 = vand.u32 2147483647, %v374_v18  ;;  %v619_v50 = vsub.f32 %v581_v23, %v611_v43 }
 0x15a   : > { %v1450_v25 = vand.u32 2147483647, %v373_v19  ;;  %v585_v26 = vpop.permute.xlu1 %584  ;;  %v622_v56 = vand.u32 2147483647, %v618_v51 }
 0x15b   : > { %v583_v27 = vpop.permute.xlu0 %582  ;;  %v595_v21 = vsub.f32 %v1375_v31, %v585_v26  ;;  %411 = vrot.lane.b32.xlu1 %v1448_v24, %s1123_s11  ;;  %v623_v54 = vand.u32 2147483647, %v619_v50 }
 0x15c   : > { %v594_v22 = vsub.f32 %v1377_v32, %v583_v27  ;;  %409 = vrot.lane.b32.xlu0 %v1450_v25, %s1123_s11  ;;  %v667_v59 = vrot.slane %v622_v56, 2 }
 0x15d   : > { %v599_v35 = vand.u32 2147483647, %v595_v21  ;;  %v668_v58 = vrot.slane %v623_v54, 2 }
 0x15e   : > { %v598_v36 = vand.u32 2147483647, %v594_v22  ;;  %v589_v37 = vpop.permute.xlu1 %588 }
 0x15f   : > { %v587_v38 = vpop.permute.xlu0 %586  ;;  %v597_v31 = vsub.f32 %v1384_v41, %v589_v37  ;;  %630 = vrot.lane.b32.xlu1 %v599_v35, %s1123_s11  ;;  %v447_v41 = vrot.slane %v399_v44, 2  ;;  %v669_v60 = vsel %vm277_vm1, %v667_v59, %v668_v58 }
 0x160   : > { %v596_v32 = vsub.f32 %v1386_v42, %v587_v38  ;;  %628 = vrot.lane.b32.xlu0 %v598_v36, %s1123_s11  ;;  %v620_v42 = vand.u32 2147483647, %v616_v45 }
 0x161   : > { %v1464_v46 = vand.u32 2147483647, %v597_v31  ;;  %v449_v52 = vsel %vm277_vm1, %v447_v41, %v448_v48 }
 0x162   : > { %v1466_v47 = vand.u32 2147483647, %v596_v32  ;;  %v664_v55 = vrot.slane %v620_v42, 2 }
 0x163   : > { %634 = vrot.lane.b32.xlu1 %v1464_v46, %s1123_s11  ;;  %v453_v61 = vpop.permute.xlu1 %452 }
 0x164   : > { %632 = vrot.lane.b32.xlu0 %v1466_v47, %s1123_s11  ;;  %v666_v57 = vsel %vm277_vm1, %v664_v55, %v665_v53  ;;  %v451_v62 = vpop.permute.xlu0 %450 }
 0x167   : > { %456 = vrot.lane.b32.xlu1 %v448_v48, %s1123_s11 }
 0x168   : > { %454 = vrot.lane.b32.xlu0 %v449_v52, %s1123_s11 }
 0x16b   : > { %672 = vrot.lane.b32.xlu1 %v665_v53, %s1123_s11 }
 0x16c   : > { %670 = vrot.lane.b32.xlu0 %v666_v57, %s1123_s11 }
 0x16f   : > { %676 = vrot.lane.b32.xlu1 %v668_v58, %s1123_s11 }
 0x170   : > { %674 = vrot.lane.b32.xlu0 %v669_v60, %s1123_s11 }
 0x1c9   : > { %v408_v63 = vpop.permute.xlu1 %407 }
 0x1ca   : > { %v406_v0 = vpop.permute.xlu0 %405  ;;  %v418_v1 = vsub.f32 %v1436_v11, %v408_v63 }
 0x1cb   : > { %v417_v2 = vsub.f32 %v1438_v12, %v406_v0 }
 0x1cc   : > { %v422_v3 = vand.u32 2147483647, %v418_v1 }
 0x1cd   : > { %v421_v4 = vand.u32 2147483647, %v417_v2  ;;  %v412_v5 = vpop.permute.xlu1 %411 }
 0x1ce   : > { %v410_v6 = vpop.permute.xlu0 %409  ;;  %433 = vst.msk [vmem:[%s1396_s20 + $0x9] sm:$0x3f] %vm432_vm4, %v422_v3  ;;  %v420_v7 = vsub.f32 %v1448_v24, %v412_v5 }
 0x1cf   : > { %431 = vst.msk [vmem:[%s1396_s20 + $0x1] sm:$0xff] %vm430_vm5, %v421_v4  ;;  %v419_v8 = vsub.f32 %v1450_v25, %v410_v6 }
 0x1d0   : > { %v424_v9 = vand.u32 2147483647, %v420_v7 }
 0x1d1   : > { %v423_v10 = vand.u32 2147483647, %v419_v8  ;;  %v631_v11 = vpop.permute.xlu1 %630 }
 0x1d2   : > { %v629_v12 = vpop.permute.xlu0 %628  ;;  %435 = vst.msk [vmem:[%s1396_s20 + $0x19] sm:$0x3f] %vm432_vm4, %v424_v9  ;;  %v641_v13 = vsub.f32 %v599_v35, %v631_v11 }
 0x1d3   : > { %434 = vst.msk [vmem:[%s1396_s20 + $0x11] sm:$0xff] %vm430_vm5, %v423_v10  ;;  %v640_v14 = vsub.f32 %v598_v36, %v629_v12 }
 0x1d4   : > { %v645_v15 = vand.u32 2147483647, %v641_v13 }
 0x1d5   : > { %v644_v16 = vand.u32 2147483647, %v640_v14  ;;  %v635_v17 = vpop.permute.xlu1 %634  ;;  %v437_v19 = vld [vmem:[%s1396_s20 + $0xa] sm:$0xf] }
 0x1d6   : > { %v633_v18 = vpop.permute.xlu0 %632  ;;  %v436_v20 = vld [vmem:[%s1396_s20 + $0x2] sm:$0xff]  ;;  %653 = vst.msk [vmem:[%s1426_s29 + $0x9] sm:$0x3f] %vm432_vm4, %v645_v15  ;;  %v643_v23 = vsub.f32 %v1464_v46, %v635_v17  ;;  %v463_v25 = vadd.f32 %v453_v61, %v437_v19 }
 0x1d7   : > { %652 = vst.msk [vmem:[%s1426_s29 + $0x1] sm:$0xff] %vm430_vm5, %v644_v16  ;;  %v642_v24 = vsub.f32 %v1466_v47, %v633_v18  ;;  %v462_v26 = vadd.f32 %v451_v62, %v436_v20 }
 0x1d8   : > { %v647_v27 = vand.u32 2147483647, %v643_v23  ;;  %469 = vst.msk [vmem:[%s1396_s20 + $0xa] sm:$0xf] %vm468_vm6, %v463_v25 }
 0x1d9   : > { %v646_v28 = vand.u32 2147483647, %v642_v24  ;;  %467 = vst.msk [vmem:[%s1396_s20 + $0x2] sm:$0xff] %vm466_vm7, %v462_v26  ;;  %v439_v29 = vld [vmem:[%s1396_s20 + $0x1a] sm:$0xf]  ;;  %v457_v21 = vpop.permute.xlu1 %456 }
 0x1da   : > { %v438_v22 = vld [vmem:[%s1396_s20 + $0x12] sm:$0xff]  ;;  %v455_v30 = vpop.permute.xlu0 %454  ;;  %655 = vst.msk [vmem:[%s1426_s29 + $0x19] sm:$0x3f] %vm432_vm4, %v647_v27  ;;  %v465_v33 = vadd.f32 %v457_v21, %v439_v29 }
 0x1db   : > { %654 = vst.msk [vmem:[%s1426_s29 + $0x11] sm:$0xff] %vm430_vm5, %v646_v28  ;;  %v464_v34 = vadd.f32 %v455_v30, %v438_v22 }
 0x1dc   : > { %471 = vst.msk [vmem:[%s1396_s20 + $0x1a] sm:$0xf] %vm468_vm6, %v465_v33 }
 0x1dd   : > { %470 = vst.msk [vmem:[%s1396_s20 + $0x12] sm:$0xff] %vm466_vm7, %v464_v34  ;;  %v657_v35 = vld [vmem:[%s1426_s29 + $0xa] sm:$0xf]  ;;  %v673_v36 = vpop.permute.xlu1 %672 }
 0x1de   : > { %v656_v37 = vld [vmem:[%s1426_s29 + $0x2] sm:$0xff]  ;;  %v671_v38 = vpop.permute.xlu0 %670  ;;  %v683_v39 = vadd.f32 %v673_v36, %v657_v35 }
 0x1df   : > { %v682_v40 = vadd.f32 %v671_v38, %v656_v37 }
 0x1e0   : > { %1026 = shalt.err (!%p1023_p11)
}
 0x1e1   : > { %s1027_s26 = scalar_lea.hbm %s1518_s19, 512  ;;  %s1031_s10 = scalar_lea.hbm %s1622_s2, 1024 }
 0x1e2   : > { %p1028_p3 = scmp.ne.s32.totalorder %s1518_s19, %s1027_s26  ;;  %p1032_p2 = scmp.lt.u32.totalorder %s1518_s19, %s1622_s2 }
 0x1e3   : > { %p1033_p4 = scmp.lt.u32.totalorder %s1031_s10, %s1027_s26  ;;  %p1035_p13 = scmp.lt.u32.totalorder %s1027_s26, %s1518_s19 }
 0x1e4   : > { %p1029_p8 = pnand %p1028_p3, %p1633_p1 }
 0x1e5   : > { %p1034_p6 = por %p1033_p4, %p1032_p2 }
 0x1e6   : > { %p1030_p0 = pneg %p1029_p8 }
 0x1e7   : > { %p1036_p12 = por %p1035_p13, %p1034_p6 }
 0x1e9   : > { %p1037_p10 = pnand %p1036_p12, %p1030_p0 }
 0x1eb   : > { %1040 = shalt.err (!%p1037_p10)
}
 0x1ec   : > { %s1126_s17 = smov 128   ;;  %s1127_s28 = smov 8   ;;  %687 = vst.msk [vmem:[%s1426_s29 + $0xa] sm:$0xf] %vm468_vm6, %v683_v39  ;;  %v659_v31 = vld [vmem:[%s1426_s29 + $0x1a] sm:$0xf]  ;;  %v677_v32 = vpop.permute.xlu1 %676  ;;  %v675_v44 = vpop.permute.xlu0 %674 }
 0x1ed   : > { %893 = dma.vmem_to_hbm [thread:$0]  (%p1633_p1), %s1520_s5, 512, %s1518_s19, %s691_s22, %s1126_s17, %s1126_s17, %s1127_s28   ;;  %v685_v45 = vadd.f32 %v677_v32, %v659_v31 }
 0x1ee   : > { %s727_s8 = sshll.u32 %s1426_s29, 4  ;;  %686 = vst.msk [vmem:[%s1426_s29 + $0x2] sm:$0xff] %vm466_vm7, %v682_v40  ;;  %v658_v43 = vld [vmem:[%s1426_s29 + $0x12] sm:$0xff]  ;;  %s1567_s27 = scalar_lea.hbm %s1623_s3, %s886_s4  ;;  %s1569_s8 = int_to_ptr.vmem [resolvable:$true] %s727_s8 }
 0x1ef   : > { %v684_v46 = vadd.f32 %v675_v44, %v658_v43  ;;  %689 = vst.msk [vmem:[%s1426_s29 + $0x1a] sm:$0xf] %vm468_vm6, %v685_v45  ;;  %s696_s5 = scalar_lea.sflag [#allocation9], %s1309_s6  ;;  %s1041_s19 = scalar_lea.vmem %s1569_s8, 512 }
 0x1f0   : > { %p1042_p5 = scmp.ne.s32.totalorder %s1569_s8, %s1041_s19  ;;  %s1128_s16 = smov [#allocation8]  }
 0x1f1   : > { %688 = vst.msk [vmem:[%s1426_s29 + $0x12] sm:$0xff] %vm466_vm7, %v684_v46  ;;  %s1045_s22 = sshll.u32 %s1128_s16, 4  ;;  %s1046_s22 = int_to_ptr.vmem [resolvable:$false] %s1045_s22 }
 0x1f2   : > { %p1043_p7 = pnand %p1042_p5, %p1633_p1  ;;  %s1047_s4 = scalar_lea.vmem %s1046_s22, 1024 }
 0x1f3   : > { %p1048_p11 = scmp.lt.s32.totalorder %s1569_s8, %s1046_s22  ;;  %p1049_p3 = scmp.lt.s32.totalorder %s1047_s4, %s1041_s19 }
 0x1f4   : > { %p1044_p9 = pneg %p1043_p7 }
 0x1f5   : > { %p1050_p8 = por %p1049_p3, %p1048_p11 }
 0x1f7   : > { %p1051_p0 = pnand %p1050_p8, %p1044_p9 }
 0x1f9   : > { %1054 = shalt.err (!%p1051_p0)
}
 0x1fa   : > { %s1055_s29 = scalar_lea.hbm %s1567_s27, 512  ;;  %s1059_s23 = scalar_lea.hbm %s1623_s3, 1024 }
 0x1fb   : > { %p1056_p2 = scmp.ne.s32.totalorder %s1567_s27, %s1055_s29  ;;  %p1060_p13 = scmp.lt.u32.totalorder %s1567_s27, %s1623_s3 }
 0x1fc   : > { %p1061_p12 = scmp.lt.u32.totalorder %s1059_s23, %s1055_s29  ;;  %p1063_p5 = scmp.lt.u32.totalorder %s1055_s29, %s1567_s27 }
 0x1fd   : > { %p1057_p4 = pnand %p1056_p2, %p1633_p1 }
 0x1fe   : > { %p1062_p10 = por %p1061_p12, %p1060_p13 }
 0x1ff   : > { %p1058_p6 = pneg %p1057_p4 }
 0x200   : > { %p1064_p7 = por %p1063_p5, %p1062_p10 }
 0x202   : > { %p1065_p9 = pnand %p1064_p7, %p1058_p6 }
 0x204   : > { %1068 = shalt.err (!%p1065_p9)
}
 0x205   : > { %894 = dma.vmem_to_hbm [thread:$0]  (%p1633_p1), %s1569_s8, 512, %s1567_s27, %s696_s5, %s1126_s17, %s1126_s17, %s1127_s28  }
 0x206 PF: > { %s742_s20 = sand.u32 1, %s1103_s12   ;;  %p1634_p11 = scmp.ne.s32.totalorder %s1629_s25, 0 }
 0x207   : > { %p1635_p3 = scmp.ge.s32.totalorder %s1115_s15, 2  ;;  %s743_s30 = scalar_lea.sflag [#allocation4], %s742_s20 }
 0x209   : > { %p905_p8 = pnand %p1635_p3, %p1634_p11 }
 0x20b   : > { %1094 = dma.done.wait (!%p905_p8), %s743_s30, 512  }
 0x20c   : > { %1096 = vsyncadd (!%p905_p8), %s743_s30, 4294966784  ;;  %s752_s24 = scalar_lea.sflag [#allocation9], %s742_s20 }
 0x20d   : > { %1098 = dma.done.wait (!%p905_p8), %s752_s24, 512  }
 0x20e   : > { %1100 = vsyncadd (!%p905_p8), %s752_s24, 4294966784  ;;  %p23_p1 = scmp.ge.s32.totalorder %s1174_s18, 4   ;;  %s1636_s12 = smov %s1107_s13 }
 0x20f   : > { %s1637_s13 = smov %s1111_s14  ;;  %s1638_s14 = smov %s1186_s21 }
 0x210   : > { %s1639_s15 = smov %s1174_s18  ;;  %25 = sbr.rel (!%p23_p1) target bundleno = 9 (0x9), region = 103 }
 0x217   :  { %757 = vsyncpa [#allocation3], 1 }
 0x218   :  { %759 = vsyncpa [#allocation3 + $0x1], 1 }
 0x219   :  { %760 = vsyncpa [#allocation6], 1 }
 0x21a   :  { %762 = vsyncpa [#allocation6 + $0x1], 1 }
 0x21b   :  { %763 = vsyncpa [#allocation4], 1 }
 0x21c   :  { %765 = vsyncpa [#allocation4 + $0x1], 1 }
 0x21d   :  { %766 = vsyncpa [#allocation9], 1 }
 0x21e   :  { %768 = vsyncpa [#allocation9 + $0x1], 1 }

</bundles_post_ra>
